<compile_context>
chip_gen: v5e
topology: v5e:2x2
jax: 0.10.0
libtpu: 0.0.40
codegen_flags: <defaults>
</compile_context>

<pallas_src>
import jax
import jax.numpy as jnp
from jax.experimental import pallas as pl
from jax.experimental.pallas import tpu as pltpu


def _round_up(x, m):
    return ((x + m - 1) // m) * m


def _cdiv(a, b):
    return (a + b - 1) // b


def _vmem_capacity_bytes():
    """Physical VMEM of the local TPU generation (128 MiB v5e/v6e, 64 MiB v7x)."""
    try:
        cap = int(getattr(pltpu.get_tpu_info(), "vmem_capacity_bytes", 0))
        if cap > 0:
            return cap
    except Exception:
        pass
    return 64 * 1024 * 1024  # conservative fallback (v7x-sized)


def _batch_tile(B):
    """Sublane-friendly batch tile (<= B so boundary blocks stay in-bounds).
    For large B force >= 2 tiles so v7x's two TensorCores both get work
    (no-op on single-TC v5e/v6e)."""
    if B <= 8:
        return B                                  # block == full batch dim
    tb = min(1024, (B // 8) * 8)
    if B >= 512:
        tb = min(tb, max(8, (((B + 1) // 2) // 8) * 8))
    return tb


def _choose_plan(B, D, H_pad, budget):
    """Pick the fused plan (w1 fully VMEM-resident, no K grid axis) when it
    fits the VMEM budget, otherwise a K-tiled fallback."""
    D_pad = _round_up(D, 128)
    TB = _batch_tile(B)

    def fixed_bytes(tb):
        # double-buffered f32 b1/w2 rows + lane-dense f32 output tile
        return 2 * 4 * (2 * H_pad) + 2 * 4 * tb

    # --- fused: one (TB, D_pad) x (D_pad, H_pad) dot per batch tile -------
    def fused_bytes(tb):
        return (2 * 4 * D_pad * H_pad            # resident w1 (f32, 2 bufs)
                + 2 * 4 * tb * D_pad             # x tile (f32, double-buffered)
                + 2 * 4 * tb * H_pad             # f32 hidden temp + headroom
                + fixed_bytes(tb))

    tb = TB
    while fused_bytes(tb) > budget and tb > 8:
        tb = max(8, _round_up(tb // 2, 8))
    if fused_bytes(tb) <= budget:
        return {"mode": "fused", "TB": tb, "TK": D_pad, "KP": D_pad}

    # --- K-tiled fallback: stream w1 in (TK, H_pad) tiles -----------------
    tb, tk = TB, min(4096, D_pad)

    def tiled_bytes(tb, tk):
        return (2 * 4 * tb * tk                  # x tile
                + 2 * 4 * tk * H_pad             # w1 tile
                + 4 * tb * H_pad                 # f32 accumulator scratch
                + fixed_bytes(tb))

    while tiled_bytes(tb, tk) > budget and tk > 128:
        tk = max(128, _round_up(tk // 2, 128))
    while tiled_bytes(tb, tk) > budget and tb > 8:
        tb = max(8, _round_up(tb // 2, 8))
    return {"mode": "tiled", "TB": tb, "TK": tk, "KP": _round_up(D, tk)}


def _epilogue_store(h, w2_row, b2_scalar, o_ref):
    """fc2 (VPU multiply + XLU lane reduce) + sigmoid + lane-dense store."""
    logit = jnp.sum(h * w2_row, axis=-1, keepdims=True) + b2_scalar   # (TB, 1)
    prob = pl.reciprocal(1.0 + jnp.exp(-logit), approx=False)         # exact
    # (TB, 1) -> (1, 1, TB): tiny XLU transpose; unmasked lane-dense vst.
    o_ref[...] = prob.T.reshape(o_ref.shape).astype(o_ref.dtype)


def _disc_fused_kernel(x_ref, w1_ref, b1_ref, w2_ref, b2_ref, o_ref):
    """grid = (batch_tiles,); w1 fully resident in VMEM."""
    h = jnp.dot(x_ref[...].astype(jnp.bfloat16),        # cast at point of use
                w1_ref[...].astype(jnp.bfloat16),
                preferred_element_type=jnp.float32)      # (TB, H_pad)
    h = jnp.maximum(h + b1_ref[...], 0.0)
    _epilogue_store(h, w2_ref[...], b2_ref[0], o_ref)


def _disc_tiled_kernel(x_ref, w1_ref, b1_ref, w2_ref, b2_ref, o_ref, acc_ref):
    """grid = (batch_tiles, k_tiles); K (input features) reduction last."""
    k = pl.program_id(1)

    @pl.when(k == 0)
    def _():
        # Seed the accumulator with the broadcast bias (saves an epilogue add).
        acc_ref[...] = jnp.broadcast_to(b1_ref[...], acc_ref.shape)

    acc_ref[...] += jnp.dot(x_ref[...].astype(jnp.bfloat16),
                            w1_ref[...].astype(jnp.bfloat16),
                            preferred_element_type=jnp.float32)

    @pl.when(k == pl.num_programs(1) - 1)
    def _():
        h = jnp.maximum(acc_ref[...], 0.0)
        _epilogue_store(h, w2_ref[...], b2_ref[0], o_ref)


@jax.jit
def discriminator_forward(x, w1, b1, w2, b2):
    """x: [B, ...] (flattened to [B, input_size] like t.reshape(t.size(0), -1)).
       w1: [input_size, hidden]  (transposed vs. PyTorch's [out, in])
       b1: [1, hidden]   w2: [hidden, 1]   b2: [1, 1]
    Returns [B, 1] float32, matching torch.sigmoid(fc2(relu(fc1(x))))."""
    B = x.shape[0]
    x2d = x.reshape(B, -1)           # free for contiguous inputs; no pad/cast
    D = x2d.shape[1]
    H = w1.shape[1]
    H_pad = _round_up(H, 128)

    cap = _vmem_capacity_bytes()
    budget = cap // 2                                  # tile-planning budget
    vmem_limit = min((cap * 3) // 4, 100 * 1024 * 1024)

    plan = _choose_plan(B, D, H_pad, budget)
    TB, TK, KP = plan["TB"], plan["TK"], plan["KP"]
    nbt = _cdiv(B, TB)
    nkt = KP // TK

    # Only the small weight tensors are padded (zeros are mathematically inert:
    # padded K rows of w1 neutralize out-of-bounds x lanes; padded hidden units
    # get b1 = 0 -> relu(0) = 0 and w2 = 0, contributing nothing).
    w1_p = jnp.pad(w1.astype(jnp.float32), ((0, KP - D), (0, H_pad - H)))
    b1_p = jnp.pad(b1.reshape(1, H).astype(jnp.float32), ((0, 0), (0, H_pad - H)))
    w2_row = jnp.pad(w2.reshape(1, H).astype(jnp.float32), ((0, 0), (0, H_pad - H)))
    b2_s = b2.reshape(1).astype(jnp.float32)

    out_shape = jax.ShapeDtypeStruct((nbt, 1, TB), jnp.float32)
    cost = pl.CostEstimate(
        flops=2 * nbt * TB * KP * H_pad + 3 * nbt * TB * H_pad,
        transcendentals=2 * nbt * TB,
        bytes_accessed=(x2d.size * x2d.dtype.itemsize
                        + w1_p.size * 4 * (nbt if plan["mode"] == "tiled" else 1)
                        + (b1_p.size + w2_row.size + b2_s.size) * 4
                        + nbt * TB * 4),
    )

    if plan["mode"] == "fused":
        out = pl.pallas_call(
            _disc_fused_kernel,
            out_shape=out_shape,
            grid_spec=pltpu.PrefetchScalarGridSpec(
                num_scalar_prefetch=0,
                grid=(nbt,),
                in_specs=[
                    pl.BlockSpec((TB, KP), lambda i: (i, 0)),          # x tile
                    pl.BlockSpec((KP, H_pad), lambda i: (0, 0)),       # resident w1
                    pl.BlockSpec((1, H_pad), lambda i: (0, 0)),        # b1 row
                    pl.BlockSpec((1, H_pad), lambda i: (0, 0)),        # w2 row
                    pl.BlockSpec(memory_space=pltpu.MemorySpace.SMEM), # b2 scalar
                ],
                out_specs=pl.BlockSpec((1, 1, TB), lambda i: (i, 0, 0)),
            ),
            compiler_params=pltpu.CompilerParams(
                dimension_semantics=("parallel",),
                vmem_limit_bytes=vmem_limit,
            ),
            cost_estimate=cost,
        )(x2d, w1_p, b1_p, w2_row, b2_s)
    else:
        out = pl.pallas_call(
            _disc_tiled_kernel,
            out_shape=out_shape,
            grid_spec=pltpu.PrefetchScalarGridSpec(
                num_scalar_prefetch=0,
                grid=(nbt, nkt),
                in_specs=[
                    pl.BlockSpec((TB, TK), lambda i, k: (i, k)),       # x tile
                    pl.BlockSpec((TK, H_pad), lambda i, k: (k, 0)),    # w1 tile
                    pl.BlockSpec((1, H_pad), lambda i, k: (0, 0)),     # b1 row
                    pl.BlockSpec((1, H_pad), lambda i, k: (0, 0)),     # w2 row
                    pl.BlockSpec(memory_space=pltpu.MemorySpace.SMEM), # b2 scalar
                ],
                out_specs=pl.BlockSpec((1, 1, TB), lambda i, k: (i, 0, 0)),
                scratch_shapes=[pltpu.VMEM((TB, H_pad), jnp.float32)],
            ),
            compiler_params=pltpu.CompilerParams(
                dimension_semantics=("parallel", "arbitrary"),
                vmem_limit_bytes=vmem_limit,
            ),
            cost_estimate=cost,
        )(x2d, w1_p, b1_p, w2_row, b2_s)

    # TODO(synk): optionally quantize x/w1 to fp8 on v7x for another ~2x cut
    # in HBM traffic (kernel is bandwidth-bound on x).
    return out.reshape(nbt * TB, 1)[:B]


def init_params(key, input_size, hidden_size):
    """Deterministic init mimicking nn.Linear's U(-1/sqrt(fan_in), +1/sqrt(fan_in)).
    Weights stored as [in, out] (transposed vs. PyTorch's [out, in])."""
    k1, k2, k3, k4 = jax.random.split(key, 4)
    lim1 = 1.0 / jnp.sqrt(jnp.float32(input_size))
    lim2 = 1.0 / jnp.sqrt(jnp.float32(hidden_size))
    w1 = jax.random.uniform(k1, (input_size, hidden_size), jnp.float32, -lim1, lim1)
    b1 = jax.random.uniform(k2, (1, hidden_size), jnp.float32, -lim1, lim1)
    w2 = jax.random.uniform(k3, (hidden_size, 1), jnp.float32, -lim2, lim2)
    b2 = jax.random.uniform(k4, (1, 1), jnp.float32, -lim2, lim2)
    return w1, b1, w2, b2


if __name__ == "__main__":
    key = jax.random.PRNGKey(0)
    k_in, k_par = jax.random.split(key)

    # Small image-like input: batch=2, channels=4, 16x16 -> input_size=1024.
    B, C, Hs, Ws = 2, 4, 16, 16
    input_size = C * Hs * Ws
    hidden_size = 32

    x = jax.random.normal(k_in, (B, C, Hs, Ws), jnp.float32)
    w1, b1, w2, b2 = init_params(k_par, input_size, hidden_size)

    y = jax.block_until_ready(discriminator_forward(x, w1, b1, w2, b2))

    # Reference in plain JAX (same math as the PyTorch forward), full f32.
    x2d = x.reshape(B, -1)
    ref = jax.nn.sigmoid(jnp.maximum(x2d @ w1 + b1, 0.0) @ w2 + b2)

    assert y.shape == (B, 1)
    # bf16 MXU inputs => looser tolerance vs the f32 reference.
    assert jnp.allclose(y, ref, atol=1e-2, rtol=1e-2), (y, ref)

    print("KERNEL_OK")
</pallas_src>

<mosaic_0001>
module attributes {stable_mosaic.version = 11 : i64} {
  func.func @_disc_fused_kernel(%arg0: i32, %arg1: memref<2x1024xf32, #tpu.memory_space<vmem>>, %arg2: memref<1024x128xf32, #tpu.memory_space<vmem>>, %arg3: memref<1x128xf32, #tpu.memory_space<vmem>>, %arg4: memref<1x128xf32, #tpu.memory_space<vmem>>, %arg5: memref<1xf32, #tpu.memory_space<smem>>, %arg6: memref<1x1x2xf32, #tpu.memory_space<vmem>>) attributes {dimension_semantics = [#tpu.dimension_semantics<parallel>], iteration_bounds = array<i64: 1>, scalar_prefetch = 0 : i64, scratch_operands = 0 : i64, tpu.core_type = #tpu.core_type<tc>, window_params = [{transform_indices = @transform_0, window_bounds = array<i64: 2, 1024>}, {pipeline_mode = #tpu.pipeline_mode<synchronous>, transform_indices = @transform_1, window_bounds = array<i64: 1024, 128>}, {pipeline_mode = #tpu.pipeline_mode<synchronous>, transform_indices = @transform_2, window_bounds = array<i64: 1, 128>}, {pipeline_mode = #tpu.pipeline_mode<synchronous>, transform_indices = @transform_3, window_bounds = array<i64: 1, 128>}, {transform_indices = @transform_4, window_bounds = array<i64: 1>}, {transform_indices = @transform_5, window_bounds = array<i64: 1, 1, 2>}]} {
    %c0 = arith.constant 0 : index
    %c0_0 = arith.constant 0 : index
    %0 = vector.load %arg1[%c0, %c0_0] : memref<2x1024xf32, #tpu.memory_space<vmem>>, vector<2x1024xf32>
    %1 = arith.truncf %0 : vector<2x1024xf32> to vector<2x1024xbf16>
    %c0_1 = arith.constant 0 : index
    %c0_2 = arith.constant 0 : index
    %2 = vector.load %arg2[%c0_1, %c0_2] : memref<1024x128xf32, #tpu.memory_space<vmem>>, vector<1024x128xf32>
    %3 = arith.truncf %2 : vector<1024x128xf32> to vector<1024x128xbf16>
    %cst = arith.constant dense<0.000000e+00> : vector<2x128xf32>
    %4 = tpu.matmul %1, %3, %cst {dimension_numbers = #tpu.dot_dimension_numbers<[1], [0], [0], [1], [0, 0, 1, 1], [], []>} : vector<2x1024xbf16>, vector<1024x128xbf16>, vector<2x128xf32> -> vector<2x128xf32>
    %c0_3 = arith.constant 0 : index
    %c0_4 = arith.constant 0 : index
    %5 = vector.load %arg3[%c0_3, %c0_4] : memref<1x128xf32, #tpu.memory_space<vmem>>, vector<1x128xf32>
    %6 = vector.broadcast %5 : vector<1x128xf32> to vector<2x128xf32>
    %7 = arith.addf %4, %6 : vector<2x128xf32>
    %cst_5 = arith.constant 0.000000e+00 : f32
    %8 = vector.broadcast %cst_5 : f32 to vector<2x128xf32>
    %9 = arith.maximumf %7, %8 : vector<2x128xf32>
    %c0_6 = arith.constant 0 : index
    %c0_7 = arith.constant 0 : index
    %10 = vector.load %arg4[%c0_6, %c0_7] : memref<1x128xf32, #tpu.memory_space<vmem>>, vector<1x128xf32>
    %c0_8 = arith.constant 0 : index
    %11 = memref.load %arg5[%c0_8] : memref<1xf32, #tpu.memory_space<smem>>
    %12 = vector.broadcast %10 : vector<1x128xf32> to vector<2x128xf32>
    %13 = arith.mulf %9, %12 : vector<2x128xf32>
    %cst_9 = arith.constant dense<0.000000e+00> : vector<2xf32>
    %14 = vector.multi_reduction <add>, %13, %cst_9 [1] : vector<2x128xf32> to vector<2xf32>
    %15 = vector.shape_cast %14 : vector<2xf32> to vector<2x1xf32>
    %16 = vector.broadcast %11 : f32 to vector<2x1xf32>
    %17 = arith.addf %15, %16 : vector<2x1xf32>
    %cst_10 = arith.constant 0.000000e+00 : f32
    %18 = vector.broadcast %cst_10 : f32 to vector<2x1xf32>
    %19 = arith.subf %18, %17 : vector<2x1xf32>
    %20 = math.exp %19 : vector<2x1xf32>
    %cst_11 = arith.constant 1.000000e+00 : f32
    %21 = vector.broadcast %cst_11 : f32 to vector<2x1xf32>
    %22 = arith.addf %21, %20 : vector<2x1xf32>
    %23 = tpu.reciprocal %22 : vector<2x1xf32> -> vector<2x1xf32>
    %24 = tpu.transpose %23, [1, 0] : vector<2x1xf32> -> vector<1x2xf32>
    %25 = vector.shape_cast %24 : vector<1x2xf32> to vector<1x1x2xf32>
    %c0_12 = arith.constant 0 : index
    %c0_13 = arith.constant 0 : index
    %c0_14 = arith.constant 0 : index
    %26 = vector.load %arg6[%c0_12, %c0_13, %c0_14] : memref<1x1x2xf32, #tpu.memory_space<vmem>>, vector<1x1x2xf32>
    tpu.vector_store %arg6[%c0_12, %c0_13, %c0_14], %25 {strides = array<i32>} : memref<1x1x2xf32, #tpu.memory_space<vmem>>, vector<1x1x2xf32>,
    return
  }
  func.func @transform_0(%arg0: i32) -> (i32, i32) {
    %c0_i32 = arith.constant 0 : i32
    %c0_i32_0 = arith.constant 0 : i32
    return %arg0, %c0_i32 : i32, i32
  }
  func.func @transform_1(%arg0: i32) -> (i32, i32) {
    %c0_i32 = arith.constant 0 : i32
    %c0_i32_0 = arith.constant 0 : i32
    %c0_i32_1 = arith.constant 0 : i32
    return %c0_i32, %c0_i32_0 : i32, i32
  }
  func.func @transform_2(%arg0: i32) -> (i32, i32) {
    %c0_i32 = arith.constant 0 : i32
    %c0_i32_0 = arith.constant 0 : i32
    %c0_i32_1 = arith.constant 0 : i32
    return %c0_i32, %c0_i32_0 : i32, i32
  }
  func.func @transform_3(%arg0: i32) -> (i32, i32) {
    %c0_i32 = arith.constant 0 : i32
    %c0_i32_0 = arith.constant 0 : i32
    %c0_i32_1 = arith.constant 0 : i32
    return %c0_i32, %c0_i32_0 : i32, i32
  }
  func.func @transform_4(%arg0: i32) -> i32 {
    %c0_i32 = arith.constant 0 : i32
    %c0_i32_0 = arith.constant 0 : i32
    return %c0_i32 : i32
  }
  func.func @transform_5(%arg0: i32) -> (i32, i32, i32) {
    %c0_i32 = arith.constant 0 : i32
    %c0_i32_0 = arith.constant 0 : i32
    %c0_i32_1 = arith.constant 0 : i32
    return %arg0, %c0_i32, %c0_i32_0 : i32, i32, i32
  }
}

</mosaic_0001>

<bundles_post_ra>
// kernel: discriminator_forward.1
= control target key start
LH: loop header
LB: loop body
LE: loop exit
PB: predicated region body
PF: predicated region fallthrough
CT: control target
= control target key end

     0   :  { %s901_s0 = inlined_call_operand.vmem [shape: f32[2,1024], index: 0, kind: input, shape index: {}]   ;;  %s902_s1 = inlined_call_operand.vmem [shape: f32[1024,128], index: 1, kind: input, shape index: {}]   ;;  %s903_s2 = inlined_call_operand.vmem [shape: f32[1,128], index: 2, kind: input, shape index: {}]   ;;  %s904_s3 = inlined_call_operand.vmem [shape: f32[1,128], index: 3, kind: input, shape index: {}]   ;;  %s905_s4 = inlined_call_operand.<no memory space> [shape: f32[1], index: 4, kind: input, shape index: {}]   ;;  %s906_s5 = inlined_call_operand.hbm [shape: f32[1,1,2], index: 5, kind: output, shape index: {}]  }
   0x1   :  { %v67_v0 = vld [vmem:[%s902_s1 + $0x70] sm:$0xff]  ;;  %v68_v1 = vld [vmem:[%s902_s1 + $0x78] sm:$0xff]  ;;  %v65_v11 = vld [vmem:[%s902_s1 + $0x60] sm:$0xff] }
   0x2   :  { %v83_v2 = vld [vmem:[%s902_s1 + $0xf0] sm:$0xff]  ;;  %v188_v3 = vpack.c.bf16 %v68_v1, %v67_v0  ;;  %v84_v4 = vld [vmem:[%s902_s1 + $0xf8] sm:$0xff]  ;;  %v66_v13 = vld [vmem:[%s902_s1 + $0x68] sm:$0xff] }
   0x3   :  { %v99_v5 = vld [vmem:[%s902_s1 + $0x170] sm:$0xff]  ;;  %v100_v6 = vld [vmem:[%s902_s1 + $0x178] sm:$0xff]  ;;  %v196_v7 = vpack.c.bf16 %v84_v4, %v83_v2  ;;  %v81_v14 = vld [vmem:[%s902_s1 + $0xe0] sm:$0xff]  ;;  %v187_v16 = vpack.c.bf16 %v66_v13, %v65_v11 }
   0x4   :  { %v204_v8 = vpack.c.bf16 %v100_v6, %v99_v5  ;;  %v115_v9 = vld [vmem:[%s902_s1 + $0x1f0] sm:$0xff]  ;;  %v116_v10 = vld [vmem:[%s902_s1 + $0x1f8] sm:$0xff]  ;;  %249 = vmatpush.bf16.msra.mxu0 %v188_v3  ;;  %v82_v15 = vld [vmem:[%s902_s1 + $0xe8] sm:$0xff] }
   0x5   :  { %v212_v12 = vpack.c.bf16 %v116_v10, %v115_v9  ;;  %262 = vmatpush.bf16.msra.mxu1 %v196_v7  ;;  %v195_v17 = vpack.c.bf16 %v82_v15, %v81_v14  ;;  %v97_v18 = vld [vmem:[%s902_s1 + $0x160] sm:$0xff]  ;;  %v98_v19 = vld [vmem:[%s902_s1 + $0x168] sm:$0xff]  ;;  %v63_v23 = vld [vmem:[%s902_s1 + $0x50] sm:$0xff] }
   0x6   :  { %275 = vmatpush.bf16.msra.mxu2 %v204_v8  ;;  %v113_v20 = vld [vmem:[%s902_s1 + $0x1e0] sm:$0xff]  ;;  %v203_v21 = vpack.c.bf16 %v98_v19, %v97_v18  ;;  %v114_v22 = vld [vmem:[%s902_s1 + $0x1e8] sm:$0xff]  ;;  %v64_v24 = vld [vmem:[%s902_s1 + $0x58] sm:$0xff] }
   0x7   :  { %288 = vmatpush.bf16.msra.mxu3 %v212_v12  ;;  %v211_v25 = vpack.c.bf16 %v114_v22, %v113_v20  ;;  %v79_v26 = vld [vmem:[%s902_s1 + $0xd0] sm:$0xff]  ;;  %v80_v27 = vld [vmem:[%s902_s1 + $0xd8] sm:$0xff]  ;;  %v186_v29 = vpack.c.bf16 %v64_v24, %v63_v23  ;;  %v61_v35 = vld [vmem:[%s902_s1 + $0x40] sm:$0xff] }
   0x8   :  { %v95_v28 = vld [vmem:[%s902_s1 + $0x150] sm:$0xff]  ;;  %250 = vmatpush.bf16.msra.mxu0 %v187_v16  ;;  %v96_v30 = vld [vmem:[%s902_s1 + $0x158] sm:$0xff]  ;;  %v194_v33 = vpack.c.bf16 %v80_v27, %v79_v26  ;;  %v62_v36 = vld [vmem:[%s902_s1 + $0x48] sm:$0xff] }
   0x9   :  { %v111_v31 = vld [vmem:[%s902_s1 + $0x1d0] sm:$0xff]  ;;  %v112_v32 = vld [vmem:[%s902_s1 + $0x1d8] sm:$0xff]  ;;  %263 = vmatpush.bf16.msra.mxu1 %v195_v17  ;;  %v202_v34 = vpack.c.bf16 %v96_v30, %v95_v28  ;;  %v77_v37 = vld [vmem:[%s902_s1 + $0xc0] sm:$0xff]  ;;  %v185_v44 = vpack.c.bf16 %v62_v36, %v61_v35 }
   0xa   :  { %276 = vmatpush.bf16.msra.mxu2 %v203_v21  ;;  %v210_v38 = vpack.c.bf16 %v112_v32, %v111_v31  ;;  %v78_v39 = vld [vmem:[%s902_s1 + $0xc8] sm:$0xff]  ;;  %v93_v40 = vld [vmem:[%s902_s1 + $0x140] sm:$0xff]  ;;  %v59_v47 = vld [vmem:[%s902_s1 + $0x30] sm:$0xff] }
   0xb   :  { %289 = vmatpush.bf16.msra.mxu3 %v211_v25  ;;  %v94_v41 = vld [vmem:[%s902_s1 + $0x148] sm:$0xff]  ;;  %v109_v42 = vld [vmem:[%s902_s1 + $0x1c0] sm:$0xff]  ;;  %v193_v45 = vpack.c.bf16 %v78_v39, %v77_v37  ;;  %v60_v48 = vld [vmem:[%s902_s1 + $0x38] sm:$0xff] }
   0xc   :  { %v110_v43 = vld [vmem:[%s902_s1 + $0x1c8] sm:$0xff]  ;;  %251 = vmatpush.bf16.msra.mxu0 %v186_v29  ;;  %v201_v46 = vpack.c.bf16 %v94_v41, %v93_v40  ;;  %v75_v49 = vld [vmem:[%s902_s1 + $0xb0] sm:$0xff]  ;;  %v76_v51 = vld [vmem:[%s902_s1 + $0xb8] sm:$0xff]  ;;  %v184_v56 = vpack.c.bf16 %v60_v48, %v59_v47 }
   0xd   :  { %264 = vmatpush.bf16.msra.mxu1 %v194_v33  ;;  %v209_v50 = vpack.c.bf16 %v110_v43, %v109_v42  ;;  %v91_v52 = vld [vmem:[%s902_s1 + $0x130] sm:$0xff]  ;;  %v92_v53 = vld [vmem:[%s902_s1 + $0x138] sm:$0xff]  ;;  %v192_v57 = vpack.c.bf16 %v76_v51, %v75_v49  ;;  %v57_v59 = vld [vmem:[%s902_s1 + $0x20] sm:$0xff] }
   0xe   :  { %277 = vmatpush.bf16.msra.mxu2 %v202_v34  ;;  %v107_v54 = vld [vmem:[%s902_s1 + $0x1b0] sm:$0xff]  ;;  %v108_v55 = vld [vmem:[%s902_s1 + $0x1b8] sm:$0xff]  ;;  %v200_v58 = vpack.c.bf16 %v92_v53, %v91_v52  ;;  %v58_v60 = vld [vmem:[%s902_s1 + $0x28] sm:$0xff] }
   0xf   :  { %290 = vmatpush.bf16.msra.mxu3 %v210_v38  ;;  %v73_v61 = vld [vmem:[%s902_s1 + $0xa0] sm:$0xff]  ;;  %v208_v62 = vpack.c.bf16 %v108_v55, %v107_v54  ;;  %v74_v63 = vld [vmem:[%s902_s1 + $0xa8] sm:$0xff]  ;;  %v183_v4 = vpack.c.bf16 %v58_v60, %v57_v59  ;;  %v55_v7 = vld [vmem:[%s902_s1 + $0x10] sm:$0xff] }
  0x10   :  { %252 = vmatpush.bf16.msra.mxu0 %v185_v44  ;;  %v89_v0 = vld [vmem:[%s902_s1 + $0x120] sm:$0xff]  ;;  %v90_v1 = vld [vmem:[%s902_s1 + $0x128] sm:$0xff]  ;;  %v191_v5 = vpack.c.bf16 %v74_v63, %v73_v61  ;;  %v56_v8 = vld [vmem:[%s902_s1 + $0x18] sm:$0xff] }
  0x11   :  { %265 = vmatpush.bf16.msra.mxu1 %v193_v45  ;;  %v105_v2 = vld [vmem:[%s902_s1 + $0x1a0] sm:$0xff]  ;;  %v106_v3 = vld [vmem:[%s902_s1 + $0x1a8] sm:$0xff]  ;;  %v199_v6 = vpack.c.bf16 %v90_v1, %v89_v0  ;;  %v71_v9 = vld [vmem:[%s902_s1 + $0x90] sm:$0xff]  ;;  %v182_v16 = vpack.c.bf16 %v56_v8, %v55_v7 }
  0x12   :  { %278 = vmatpush.bf16.msra.mxu2 %v201_v46  ;;  %v207_v10 = vpack.c.bf16 %v106_v3, %v105_v2  ;;  %v72_v11 = vld [vmem:[%s902_s1 + $0x98] sm:$0xff]  ;;  %v87_v12 = vld [vmem:[%s902_s1 + $0x110] sm:$0xff]  ;;  %v53_v17 = vld [vmem:[%s902_s1] sm:$0xff] }
  0x13   :  { %291 = vmatpush.bf16.msra.mxu3 %v209_v50  ;;  %v88_v13 = vld [vmem:[%s902_s1 + $0x118] sm:$0xff]  ;;  %v103_v14 = vld [vmem:[%s902_s1 + $0x190] sm:$0xff]  ;;  %v54_v18 = vld [vmem:[%s902_s1 + $0x8] sm:$0xff]  ;;  %v190_v20 = vpack.c.bf16 %v72_v11, %v71_v9 }
  0x14   :  { %253 = vmatpush.bf16.msra.mxu0 %v184_v56  ;;  %v104_v15 = vld [vmem:[%s902_s1 + $0x198] sm:$0xff]  ;;  %v69_v19 = vld [vmem:[%s902_s1 + $0x80] sm:$0xff]  ;;  %v198_v21 = vpack.c.bf16 %v88_v13, %v87_v12  ;;  %v70_v22 = vld [vmem:[%s902_s1 + $0x88] sm:$0xff]  ;;  %v181_v32 = vpack.c.bf16 %v54_v18, %v53_v17 }
  0x15   :  { %266 = vmatpush.bf16.msra.mxu1 %v192_v57  ;;  %v85_v23 = vld [vmem:[%s902_s1 + $0x100] sm:$0xff]  ;;  %v86_v24 = vld [vmem:[%s902_s1 + $0x108] sm:$0xff]  ;;  %v206_v25 = vpack.c.bf16 %v104_v15, %v103_v14  ;;  %v131_v28 = vld [vmem:[%s902_s1 + $0x270] sm:$0xff]  ;;  %v189_v36 = vpack.c.bf16 %v70_v22, %v69_v19 }
  0x16   :  { %279 = vmatpush.bf16.msra.mxu2 %v200_v58  ;;  %v101_v26 = vld [vmem:[%s902_s1 + $0x180] sm:$0xff]  ;;  %v102_v27 = vld [vmem:[%s902_s1 + $0x188] sm:$0xff]  ;;  %v132_v29 = vld [vmem:[%s902_s1 + $0x278] sm:$0xff]  ;;  %v197_v37 = vpack.c.bf16 %v86_v24, %v85_v23 }
  0x17   :  { %292 = vmatpush.bf16.msra.mxu3 %v208_v62  ;;  %v147_v30 = vld [vmem:[%s902_s1 + $0x2f0] sm:$0xff]  ;;  %v22_v31 = vld [vmem:[%s901_s0] sm:$0xff]  ;;  %v148_v33 = vld [vmem:[%s902_s1 + $0x2f8] sm:$0xff]  ;;  %v205_v40 = vpack.c.bf16 %v102_v27, %v101_v26  ;;  %v220_v41 = vpack.c.bf16 %v132_v29, %v131_v28 }
  0x18   :  { %254 = vmatpush.bf16.msra.mxu0 %v183_v4  ;;  %v163_v34 = vld [vmem:[%s902_s1 + $0x370] sm:$0xff]  ;;  %v164_v35 = vld [vmem:[%s902_s1 + $0x378] sm:$0xff]  ;;  %26 = vst [vmem:[#allocation1] ss:$4 sm:$0xff] %v22_v31  ;;  %v129_v42 = vld [vmem:[%s902_s1 + $0x260] sm:$0xff]  ;;  %v228_v43 = vpack.c.bf16 %v148_v33, %v147_v30 }
  0x19   :  { %267 = vmatpush.bf16.msra.mxu1 %v191_v5  ;;  %v179_v38 = vld [vmem:[%s902_s1 + $0x3f0] sm:$0xff]  ;;  %v180_v39 = vld [vmem:[%s902_s1 + $0x3f8] sm:$0xff]  ;;  %v236_v44 = vpack.c.bf16 %v164_v35, %v163_v34  ;;  %v130_v45 = vld [vmem:[%s902_s1 + $0x268] sm:$0xff] }
  0x1a   :  { %280 = vmatpush.bf16.msra.mxu2 %v199_v6  ;;  %v145_v46 = vld [vmem:[%s902_s1 + $0x2e0] sm:$0xff]  ;;  %v146_v47 = vld [vmem:[%s902_s1 + $0x2e8] sm:$0xff]  ;;  %v244_v48 = vpack.c.bf16 %v180_v39, %v179_v38  ;;  %v127_v53 = vld [vmem:[%s902_s1 + $0x250] sm:$0xff]  ;;  %v219_v55 = vpack.c.bf16 %v130_v45, %v129_v42 }
  0x1b   :  { %293 = vmatpush.bf16.msra.mxu3 %v207_v10  ;;  %v161_v49 = vld [vmem:[%s902_s1 + $0x360] sm:$0xff]  ;;  %v162_v50 = vld [vmem:[%s902_s1 + $0x368] sm:$0xff]  ;;  %v128_v54 = vld [vmem:[%s902_s1 + $0x258] sm:$0xff]  ;;  %v227_v60 = vpack.c.bf16 %v146_v47, %v145_v46 }
  0x1c   :  { %255 = vmatpush.bf16.msra.mxu0 %v182_v16  ;;  %v177_v51 = vld [vmem:[%s902_s1 + $0x3e0] sm:$0xff]  ;;  %v178_v52 = vld [vmem:[%s902_s1 + $0x3e8] sm:$0xff]  ;;  %v143_v56 = vld [vmem:[%s902_s1 + $0x2d0] sm:$0xff]  ;;  %v235_v61 = vpack.c.bf16 %v162_v50, %v161_v49  ;;  %v218_v9 = vpack.c.bf16 %v128_v54, %v127_v53 }
  0x1d   :  { %268 = vmatpush.bf16.msra.mxu1 %v190_v20  ;;  %v144_v57 = vld [vmem:[%s902_s1 + $0x2d8] sm:$0xff]  ;;  %v159_v58 = vld [vmem:[%s902_s1 + $0x350] sm:$0xff]  ;;  %v243_v0 = vpack.c.bf16 %v178_v52, %v177_v51  ;;  %v125_v12 = vld [vmem:[%s902_s1 + $0x240] sm:$0xff] }
  0x1e   :  { %281 = vmatpush.bf16.msra.mxu2 %v198_v21  ;;  %v160_v59 = vld [vmem:[%s902_s1 + $0x358] sm:$0xff]  ;;  %v175_v5 = vld [vmem:[%s902_s1 + $0x3d0] sm:$0xff]  ;;  %v226_v10 = vpack.c.bf16 %v144_v57, %v143_v56  ;;  %v126_v13 = vld [vmem:[%s902_s1 + $0x248] sm:$0xff] }
  0x1f   :  { %294 = vmatpush.bf16.msra.mxu3 %v206_v25  ;;  %v31_v62 = vld.sshfl [vmem:[#allocation1 + $0x10] sm:$0xff pattern:$0x73625140]  ;;  %v29_v63 = vld.sshfl [vmem:[#allocation1] sm:$0xff pattern:$0x73625140]  ;;  %v234_v11 = vpack.c.bf16 %v160_v59, %v159_v58  ;;  %v217_v21 = vpack.c.bf16 %v126_v13, %v125_v12 }
  0x20   :  { %256 = vmatpush.bf16.msra.mxu0 %v181_v32  ;;  %v47_v1 = vpack.c.bf16 %v31_v62, %v31_v62  ;;  %v45_v2 = vpack.c.bf16 %v29_v63, %v29_v63  ;;  %v32_v3 = vld.sshfl [vmem:[#allocation1 + $0x18] sm:$0xff pattern:$0x73625140]  ;;  %v30_v4 = vld.sshfl [vmem:[#allocation1 + $0x8] sm:$0xff pattern:$0x73625140] }
  0x21   :  { %269 = vmatpush.bf16.msra.mxu1 %v189_v36  ;;  %v176_v6 = vld [vmem:[%s902_s1 + $0x3d8] sm:$0xff]  ;;  %v48_v7 = vpack.c.bf16 %v32_v3, %v32_v3  ;;  %v46_v8 = vpack.c.bf16 %v30_v4, %v30_v4  ;;  %v141_v14 = vld [vmem:[%s902_s1 + $0x2c0] sm:$0xff]  ;;  %v142_v16 = vld [vmem:[%s902_s1 + $0x2c8] sm:$0xff] }
  0x22   :  { %282 = vmatpush.bf16.msra.mxu2 %v197_v37  ;;  %v242_v15 = vpack.c.bf16 %v176_v6, %v175_v5  ;;  %v157_v17 = vld [vmem:[%s902_s1 + $0x340] sm:$0xff]  ;;  %v158_v18 = vld [vmem:[%s902_s1 + $0x348] sm:$0xff]  ;;  %v123_v22 = vld [vmem:[%s902_s1 + $0x230] sm:$0xff]  ;;  %v225_v23 = vpack.c.bf16 %v142_v16, %v141_v14 }
  0x23   :  { %295 = vmatpush.bf16.msra.mxu3 %v205_v40  ;;  %257 = vmatmul.bf16.vlgmr.msra.gmra.mxu0 %v45_v2  ;;  %v173_v19 = vld [vmem:[%s902_s1 + $0x3c0] sm:$0xff]  ;;  %v174_v20 = vld [vmem:[%s902_s1 + $0x3c8] sm:$0xff]  ;;  %v233_v24 = vpack.c.bf16 %v158_v18, %v157_v17  ;;  %v124_v25 = vld [vmem:[%s902_s1 + $0x238] sm:$0xff] }
  0x24   :  { %301 = vmatpush.bf16.msrb.mxu0 %v220_v41  ;;  %270 = vmatmul.bf16.vlgmr.msra.gmra.mxu1 %v46_v8  ;;  %v139_v26 = vld [vmem:[%s902_s1 + $0x2b0] sm:$0xff]  ;;  %v140_v27 = vld [vmem:[%s902_s1 + $0x2b8] sm:$0xff]  ;;  %v241_v28 = vpack.c.bf16 %v174_v20, %v173_v19  ;;  %v121_v33 = vld [vmem:[%s902_s1 + $0x220] sm:$0xff]  ;;  %v216_v35 = vpack.c.bf16 %v124_v25, %v123_v22 }
  0x25   :  { %314 = vmatpush.bf16.msrb.mxu1 %v228_v43  ;;  %283 = vmatmul.bf16.vlgmr.msra.gmra.mxu2 %v47_v1  ;;  %v155_v29 = vld [vmem:[%s902_s1 + $0x330] sm:$0xff]  ;;  %v156_v30 = vld [vmem:[%s902_s1 + $0x338] sm:$0xff]  ;;  %v122_v34 = vld [vmem:[%s902_s1 + $0x228] sm:$0xff]  ;;  %v224_v38 = vpack.c.bf16 %v140_v27, %v139_v26 }
  0x26   :  { %327 = vmatpush.bf16.msrb.mxu2 %v236_v44  ;;  %296 = vmatmul.bf16.vlgmr.msra.gmra.mxu3 %v48_v7  ;;  %v171_v31 = vld [vmem:[%s902_s1 + $0x3b0] sm:$0xff]  ;;  %v172_v32 = vld [vmem:[%s902_s1 + $0x3b8] sm:$0xff]  ;;  %v137_v36 = vld [vmem:[%s902_s1 + $0x2a0] sm:$0xff]  ;;  %v232_v39 = vpack.c.bf16 %v156_v30, %v155_v29 }
  0x27   :  { %340 = vmatpush.bf16.msrb.mxu3 %v244_v48  ;;  %v23_v37 = vld [vmem:[%s901_s0 + $0x8] sm:$0xff] }
  0x28   :  { %302 = vmatpush.bf16.msrb.mxu0 %v219_v55  ;;  %28 = vst [vmem:[#allocation1 + $0x20] ss:$4 sm:$0xff] %v23_v37 }
  0x29   :  { %315 = vmatpush.bf16.msrb.mxu1 %v227_v60 }
  0x2a   :  { %328 = vmatpush.bf16.msrb.mxu2 %v235_v61 }
  0x2b   :  { %341 = vmatpush.bf16.msrb.mxu3 %v243_v0 }
  0x2c   :  { %303 = vmatpush.bf16.msrb.mxu0 %v218_v9 }
  0x2d   :  { %316 = vmatpush.bf16.msrb.mxu1 %v226_v10 }
  0x2e   :  { %329 = vmatpush.bf16.msrb.mxu2 %v234_v11 }
  0x2f   :  { %342 = vmatpush.bf16.msrb.mxu3 %v242_v15 }
  0x30   :  { %304 = vmatpush.bf16.msrb.mxu0 %v217_v21 }
  0x31   :  { %317 = vmatpush.bf16.msrb.mxu1 %v225_v23 }
  0x32   :  { %330 = vmatpush.bf16.msrb.mxu2 %v233_v24 }
  0x33   :  { %11 = vsyncpa [#allocation4], 0  ;;  %343 = vmatpush.bf16.msrb.mxu3 %v241_v28  ;;  %v240_v40 = vpack.c.bf16 %v172_v32, %v171_v31  ;;  %v138_v41 = vld [vmem:[%s902_s1 + $0x2a8] sm:$0xff]  ;;  %v153_v42 = vld [vmem:[%s902_s1 + $0x320] sm:$0xff]  ;;  %v215_v46 = vpack.c.bf16 %v122_v34, %v121_v33  ;;  %vm360_vm0 = vcmask 1041408   ;;  %s425_s7 = sshll.u32 %s906_s5, 4  ;;  %s426_s7 = int_to_ptr.hbm [resolvable:$true] %s425_s7 }
  0x34   :  { %v154_v43 = vld [vmem:[%s902_s1 + $0x328] sm:$0xff]  ;;  %v169_v44 = vld [vmem:[%s902_s1 + $0x3a0] sm:$0xff]  ;;  %305 = vmatpush.bf16.msrb.mxu0 %v216_v35  ;;  %v223_v47 = vpack.c.bf16 %v138_v41, %v137_v36  ;;  %v119_v49 = vld [vmem:[%s902_s1 + $0x210] sm:$0xff]  ;;  %vm416_vm5 = vcmask 8192  }
  0x35   :  { %v170_v45 = vld [vmem:[%s902_s1 + $0x3a8] sm:$0xff]  ;;  %318 = vmatpush.bf16.msrb.mxu1 %v224_v38  ;;  %v231_v48 = vpack.c.bf16 %v154_v43, %v153_v42  ;;  %v120_v50 = vld [vmem:[%s902_s1 + $0x218] sm:$0xff]  ;;  %v135_v51 = vld [vmem:[%s902_s1 + $0x290] sm:$0xff] }
  0x36   :  { %331 = vmatpush.bf16.msrb.mxu2 %v232_v39  ;;  %v239_v52 = vpack.c.bf16 %v170_v45, %v169_v44  ;;  %v136_v53 = vld [vmem:[%s902_s1 + $0x298] sm:$0xff]  ;;  %v151_v54 = vld [vmem:[%s902_s1 + $0x310] sm:$0xff]  ;;  %v214_v58 = vpack.c.bf16 %v120_v50, %v119_v49  ;;  %v117_v61 = vld [vmem:[%s902_s1 + $0x200] sm:$0xff] }
  0x37   :  { %344 = vmatpush.bf16.msrb.mxu3 %v240_v40  ;;  %v152_v55 = vld [vmem:[%s902_s1 + $0x318] sm:$0xff]  ;;  %v167_v56 = vld [vmem:[%s902_s1 + $0x390] sm:$0xff]  ;;  %v222_v59 = vpack.c.bf16 %v136_v53, %v135_v51  ;;  %v118_v62 = vld [vmem:[%s902_s1 + $0x208] sm:$0xff] }
  0x38   :  { %v168_v57 = vld [vmem:[%s902_s1 + $0x398] sm:$0xff]  ;;  %306 = vmatpush.bf16.msrb.mxu0 %v215_v46  ;;  %v230_v60 = vpack.c.bf16 %v152_v55, %v151_v54  ;;  %v133_v63 = vld [vmem:[%s902_s1 + $0x280] sm:$0xff]  ;;  %v134_v1 = vld [vmem:[%s902_s1 + $0x288] sm:$0xff]  ;;  %v213_v6 = vpack.c.bf16 %v118_v62, %v117_v61 }
  0x39   :  { %319 = vmatpush.bf16.msrb.mxu1 %v223_v47  ;;  %v238_v0 = vpack.c.bf16 %v168_v57, %v167_v56  ;;  %v149_v2 = vld [vmem:[%s902_s1 + $0x300] sm:$0xff]  ;;  %v150_v3 = vld [vmem:[%s902_s1 + $0x308] sm:$0xff]  ;;  %v221_v8 = vpack.c.bf16 %v134_v1, %v133_v63  ;;  %v35_v11 = vld.sshfl [vmem:[#allocation1 + $0x30] sm:$0xff pattern:$0x73625140]  ;;  %v364_v47 = vstv %s905_s4 }
  0x3a   :  { %332 = vmatpush.bf16.msrb.mxu2 %v231_v48  ;;  %v165_v4 = vld [vmem:[%s902_s1 + $0x380] sm:$0xff]  ;;  %v166_v5 = vld [vmem:[%s902_s1 + $0x388] sm:$0xff]  ;;  %v229_v9 = vpack.c.bf16 %v150_v3, %v149_v2  ;;  %v36_v13 = vld.sshfl [vmem:[#allocation1 + $0x38] sm:$0xff pattern:$0x73625140]  ;;  %v51_v16 = vpack.c.bf16 %v35_v11, %v35_v11 }
  0x3b   :  { %345 = vmatpush.bf16.msrb.mxu3 %v239_v52  ;;  %v33_v7 = vld.sshfl [vmem:[#allocation1 + $0x20] sm:$0xff pattern:$0x73625140]  ;;  %v34_v10 = vld.sshfl [vmem:[#allocation1 + $0x28] sm:$0xff pattern:$0x73625140]  ;;  %v237_v12 = vpack.c.bf16 %v166_v5, %v165_v4  ;;  %v52_v17 = vpack.c.bf16 %v36_v13, %v36_v13 }
  0x3c   :  { %307 = vmatpush.bf16.msrb.mxu0 %v214_v58  ;;  %v49_v14 = vpack.c.bf16 %v33_v7, %v33_v7  ;;  %v50_v15 = vpack.c.bf16 %v34_v10, %v34_v10  ;;  %v436_v23 = vld [vmem:[%s903_s2] ss:$0 sm:$0xff] }
  0x3d   :  { %320 = vmatpush.bf16.msrb.mxu1 %v222_v59  ;;  %v437_v41 = vld [vmem:[%s904_s3] ss:$0 sm:$0xff]  ;;  %s468_s3 = smov [#allocation3]  }
  0x3e   :  { %333 = vmatpush.bf16.msrb.mxu2 %v230_v60  ;;  %s423_s4 = sshll.u32 %s468_s3, 4  ;;  %s424_s4 = int_to_ptr.vmem [resolvable:$true] %s423_s4 }
  0x3f   :  { %346 = vmatpush.bf16.msrb.mxu3 %v238_v0 }
  0x40   :  { %308 = vmatpush.bf16.msrb.mxu0 %v213_v6 }
  0x41   :  { %321 = vmatpush.bf16.msrb.mxu1 %v221_v8 }
  0x42   :  { %334 = vmatpush.bf16.msrb.mxu2 %v229_v9 }
  0x43   :  { %347 = vmatpush.bf16.msrb.mxu3 %v237_v12  ;;  %309 = vmatmul.bf16.vlgmr.msrb.gmra.mxu0 %v49_v14 }
  0x44   :  { %322 = vmatmul.bf16.vlgmr.msrb.gmra.mxu1 %v50_v15 }
  0x45   :  { %335 = vmatmul.bf16.vlgmr.msrb.gmra.mxu2 %v51_v16 }
  0x46   :  { %348 = vmatmul.bf16.vlgmr.msrb.gmra.mxu3 %v52_v17 }
  0xa0   :  { %v258_v18 = vpop.f32.mrf.mxu0 }
  0xa1   :  { %v271_v19 = vpop.f32.mrf.mxu1  ;;  %v259_v26 = vadd.f32 %v436_v23, %v258_v18 }
  0xa3   :  { %v272_v28 = vadd.f32 %v271_v19, %v259_v26 }
  0xa8   :  { %v284_v20 = vpop.f32.mrf.mxu2  ;;  %v260_v22 = vpop.f32.mrf.mxu0 }
  0xa9   :  { %v297_v21 = vpop.f32.mrf.mxu3  ;;  %v273_v24 = vpop.f32.mrf.mxu1  ;;  %v285_v29 = vadd.f32 %v284_v20, %v272_v28 }
  0xab   :  { %v298_v30 = vadd.f32 %v297_v21, %v285_v29 }
  0xb0   :  { %v286_v25 = vpop.f32.mrf.mxu2 }
  0xb1   :  { %v299_v27 = vpop.f32.mrf.mxu3 }
  0xc0   :  { %v310_v31 = vpop.f32.mrf.mxu0 }
  0xc1   :  { %v323_v32 = vpop.f32.mrf.mxu1  ;;  %v311_v33 = vadd.f32 %v310_v31, %v298_v30 }
  0xc3   :  { %v324_v34 = vadd.f32 %v323_v32, %v311_v33 }
  0xc8   :  { %v336_v35 = vpop.f32.mrf.mxu2  ;;  %v312_v38 = vpop.f32.mrf.mxu0 }
  0xc9   :  { %v337_v36 = vadd.f32 %v336_v35, %v324_v34  ;;  %v349_v37 = vpop.f32.mrf.mxu3  ;;  %v325_v39 = vpop.f32.mrf.mxu1 }
  0xcb   :  { %v350_v40 = vadd.f32 %v349_v37, %v337_v36 }
  0xcd   :  { %v353_v42 = vmax.f32 %v350_v40, 0.0 }
  0xcf   :  { %v359_v43 = vmul.f32 %v437_v41, %v353_v42 }
  0xd0   :  { %v338_v44 = vpop.f32.mrf.mxu2 }
  0xd1   :  { %v351_v45 = vpop.f32.mrf.mxu3  ;;  %v361_v46 = vsel %vm360_vm0, %v359_v43, 0.0 }
  0xd2   :  { %362 = vadd.xlane.f32.xlu0 %v361_v46 }
 0x145   :  { %v363_v48 = vpop.xlane.xlu0 %362 }
 0x146   :  { %v365_v49 = vadd.f32 %v364_v47, %v363_v48 }
 0x148   :  { %v366_v50 = vsub.f32 0.0, %v365_v49 }
 0x14a   :  { %v367_v51 = vmul.f32 1.442695, %v366_v50 }
 0x14c   :  { %438 = vpow2.f32 %v367_v51 }
 0x152   :  { %v439_v52 = vpop.eup %438 }
 0x153   :  { %v369_v53 = vadd.f32 1.0, %v439_v52 }
 0x155   :  { %440 = vrcp.f32 %v369_v53  ;;  %v381_v57 = vand.u32 2147483648, %v369_v53  ;;  %v379_v59 = vand.u32 2147483647, %v369_v53  ;;  %vm375_vm2 = vweird.f32 %v369_v53 }
 0x157   :  { %v382_v61 = vor.u32 1.1754944e-38, %v381_v57  ;;  %vm380_vm4 = vcmp.eq.f32.partialorder %v379_v59, 8.507059e+37 }
 0x15b   :  { %v441_v54 = vpop.eup %440 }
 0x15c   :  { %v371_v55 = vmul.f32 %v441_v54, %v369_v53  ;;  %vm376_vm1 = vweird.f32 %v441_v54 }
 0x15d   :  { %vm377_vm3 = vmor %vm375_vm2, %vm376_vm1 }
 0x15e   :  { %v372_v56 = vsub.f32 1.0, %v371_v55 }
 0x160   :  { %v373_v58 = vmul.f32 %v441_v54, %v372_v56 }
 0x162   :  { %v374_v60 = vadd.f32 %v441_v54, %v373_v58 }
 0x164   :  { %v378_v62 = vsel %vm377_vm3, %v441_v54, %v374_v60 }
 0x165   :  { %v383_v63 = vsel %vm380_vm4, %v382_v61, %v378_v62 }
 0x166   :  { %384 = vxpose.xlu0.b32.start.end [1/1] (short) (narrow) %v383_v63, 8 }
 0x20a   :  { %v400_v0 = vpop.trf.xlu0 }
 0x20b   :  { %417 = vst.msk [vmem:[#allocation3] sm:$0x1] %vm416_vm5, %v400_v0 }
 0x20c   :  { %428 = dma.vmem_to_hbm [thread:$0]  %s424_s4, 16, %s426_s7, [#allocation4]  }
 0x20d   :  { %466 = dma.done.wait [#allocation4], 16  }
 0x20e   :  { %467 = vsyncadd [#allocation4], 4294967280 }
 0x20f   :  { %433 = vsyncpa [#allocation4], 1 }

</bundles_post_ra>
